<compile_context>
chip_gen: v7x
topology: tpu7x:2x2x1
jax: 0.10.0
libtpu: 0.0.40
codegen_flags: <defaults>
</compile_context>

<pallas_src>
import functools

import numpy as np
import jax
import jax.numpy as jnp
from jax import lax
from jax.experimental import pallas as pl
from jax.experimental.pallas import tpu as pltpu

_INT32_MAX = 2 ** 31 - 1


def _round_up(x, m):
    return ((x + m - 1) // m) * m


# --------------------------------------------------------------------------
# Phase 1: per-sample cross-entropy (both heads) + argmax-disagreement flag
# --------------------------------------------------------------------------
def _ce_disagree_kernel(y1_ref, y2_ref, tgt_ref, ce1_ref, ce2_ref, d_ref):
    tile_n, num_classes = y1_ref.shape
    y1 = y1_ref[...]                       # native dtype (f32 / bf16)
    y2 = y2_ref[...]
    tgt = tgt_ref[...]                     # (tile_n, 1) int32

    iota_c = lax.broadcasted_iota(jnp.int32, (tile_n, num_classes), 1)
    onehot = iota_c == tgt                 # (tile_n, C) bool
    iota_f = iota_c.astype(jnp.float32)
    no_max = jnp.float32(num_classes)

    def ce_and_argmax(y):
        mx = jnp.max(y, axis=1, keepdims=True)
        yt = jnp.sum(jnp.where(onehot, y, jnp.zeros_like(y)),
                     axis=1, keepdims=True)              # target logit
        z = (y - mx).astype(jnp.float32)                 # upcast only the diff
        lse = jnp.log(jnp.sum(jnp.exp(z), axis=1, keepdims=True))
        ce = lse + (mx.astype(jnp.float32) - yt.astype(jnp.float32))
        # first-index argmax -> same tie-break as np.argmax
        am = jnp.min(jnp.where(y >= mx, iota_f, no_max), axis=1, keepdims=True)
        return ce, am

    ce1, am1 = ce_and_argmax(y1)
    ce2, am2 = ce_and_argmax(y2)

    ce1_ref[...] = ce1
    ce2_ref[...] = ce2
    d_ref[...] = jnp.where(am1 != am2, jnp.float32(1.0), jnp.float32(0.0))


# --------------------------------------------------------------------------
# Phase 2: lane-dense small-loss selection + the four scalar outputs
# --------------------------------------------------------------------------
def _select_kernel(kr_ref, ce1_ref, ce2_ref, d_ref, out_ref, *,
                   n_valid, n_pad, idx_iters):
    kr = kr_ref[0]
    ce1 = ce1_ref[...]                     # (1, n_pad) f32, lane-dense
    ce2 = ce2_ref[...]
    d = d_ref[...]

    idx = lax.broadcasted_iota(jnp.int32, (1, n_pad), 1)
    valid = idx < n_valid
    dis = jnp.logical_and(d > 0.5, valid)

    def count(m):                          # integer count of a boolean mask
        return jnp.sum(jnp.where(m, jnp.int32(1), jnp.int32(0)))

    n_dis = count(dis)
    use_dis = n_dis > 0
    sel = jnp.where(use_dis,
                    jnp.where(dis, jnp.int32(1), jnp.int32(0)),
                    jnp.where(valid, jnp.int32(1), jnp.int32(0))) > 0
    n_sel = jnp.where(use_dis, n_dis, jnp.int32(n_valid))
    n_sel_f = n_sel.astype(jnp.float32)

    # num_keep = int(keep_rate * n_selected).
    # TODO(synk): f32 kr*n can differ by one from the reference's f64
    # int(keep_rate * n) when the product sits within ~1e-6 of an integer;
    # also clamped to >= 1 (the reference would NaN when num_keep == 0).
    nk = jnp.floor(kr * n_sel_f * jnp.float32(1.0 + 1e-6) + jnp.float32(1e-6))
    num_keep = jnp.minimum(jnp.maximum(nk.astype(jnp.int32), jnp.int32(1)),
                           n_sel)
    num_keep_f = num_keep.astype(jnp.float32)

    int_max = jnp.int32(_INT32_MAX)

    def kth_smallest(key, k):
        # smallest t with count(key <= t) >= k  ==  k-th smallest key value
        def body(_, lohi):
            lo, hi = lohi
            mid = lo + (hi - lo) // 2
            ge = count(key <= mid) >= k
            return (jnp.where(ge, lo, mid + 1), jnp.where(ge, mid, hi))
        lo, _ = lax.fori_loop(0, 31, body, (jnp.int32(0), int_max))
        return lo

    def keep_mask(ce, k):
        # CE >= 0, so the raw f32 bit pattern viewed as int32 orders like the
        # value; non-selected / padded entries are pushed to INT32_MAX.
        key = jnp.where(sel, pltpu.bitcast(ce, jnp.int32), int_max)
        t = kth_smallest(key, k)
        lt = key < t
        eq = key == t
        need = k - count(lt)               # >= 1 by construction of t

        def body(_, lohi):                 # smallest index covering `need` ties
            lo, hi = lohi
            mid = lo + (hi - lo) // 2
            ge = count(jnp.logical_and(eq, idx <= mid)) >= need
            return (jnp.where(ge, lo, mid + 1), jnp.where(ge, mid, hi))
        v, _ = lax.fori_loop(0, idx_iters, body,
                             (jnp.int32(0), jnp.int32(n_pad - 1)))
        return jnp.logical_or(lt, jnp.logical_and(eq, idx <= v))

    keep1 = keep_mask(ce1, num_keep)
    keep2 = keep_mask(ce2, num_keep)

    sel_f = jnp.where(sel, jnp.float32(1.0), jnp.float32(0.0))
    keep1_f = jnp.where(keep1, jnp.float32(1.0), jnp.float32(0.0))
    keep2_f = jnp.where(keep2, jnp.float32(1.0), jnp.float32(0.0))

    inv_keep = jnp.float32(1.0) / num_keep_f
    inv_sel = jnp.float32(1.0) / n_sel_f

    # loss_k_update averages head-k's CE over the samples picked by the OTHER
    # head's small-loss ranking (co-teaching+ semantics).
    out_ref[0] = jnp.sum(ce1 * keep2_f) * inv_keep      # loss_1_update
    out_ref[1] = jnp.sum(ce2 * keep1_f) * inv_keep      # loss_2_update
    out_ref[2] = jnp.sum(ce1 * sel_f) * inv_sel         # loss_1.mean()
    out_ref[3] = jnp.sum(ce2 * sel_f) * inv_sel         # loss_2.mean()


# --------------------------------------------------------------------------
# Wrapper
# --------------------------------------------------------------------------
def _vmem_limit_bytes():
    cap = None
    try:
        info = pltpu.get_tpu_info()
        cap = getattr(info, "vmem_capacity_bytes", None)
    except Exception:
        cap = None
    if cap is None:
        cap = 64 << 20                     # assume the tightest (v7x per-TC)
    # leave headroom for Mosaic-internal scratch and the pipeline buffers
    return (40 << 20) if cap <= (64 << 20) else (56 << 20)


def co_teaching_loss_plus(y_1, y_2, targets, keep_rate=1.0):
    """Forward pass of CoTeachingLossPlus (weight=None, size_average=True)."""
    N, C = y_1.shape
    itemsize = jnp.dtype(y_1.dtype).itemsize
    vmem_limit = _vmem_limit_bytes()

    # Batch tile: 2 heads x 2 pipeline buffers at the input dtype plus ~4 f32
    # full-tile temporaries, budgeted against roughly half the VMEM limit.
    c_pad = _round_up(C, 128)              # lane padding inside VMEM
    bytes_per_row = c_pad * (4 * itemsize + 4 * 4)
    tile_n = 2048
    while tile_n > 8 and tile_n * bytes_per_row > vmem_limit // 2:
        tile_n //= 2
    tile_n = min(tile_n, _round_up(N, 8))

    n_pad = _round_up(N, tile_n)
    num_tiles = n_pad // tile_n

    if n_pad != N:
        y_1 = jnp.pad(y_1, ((0, n_pad - N), (0, 0)))
        y_2 = jnp.pad(y_2, ((0, n_pad - N), (0, 0)))
        targets = jnp.pad(targets, ((0, n_pad - N),))
    tgt_col = targets.reshape(n_pad, 1).astype(jnp.int32)

    # ---------------- phase 1: per-sample CE + disagreement ----------------
    # Targets ride as a tiny per-tile (tile_n, 1) block: a resident (n_pad, 1)
    # copy would lane-pad 128x in VMEM for no measurable gain.
    ce_shape = jax.ShapeDtypeStruct((n_pad, 1), jnp.float32)
    ce1_col, ce2_col, d_col = pl.pallas_call(
        _ce_disagree_kernel,
        out_shape=(ce_shape, ce_shape, ce_shape),
        grid_spec=pltpu.PrefetchScalarGridSpec(
            num_scalar_prefetch=0,
            grid=(num_tiles,),
            in_specs=[
                pl.BlockSpec((tile_n, C), lambda i: (i, 0)),   # y_1 tile
                pl.BlockSpec((tile_n, C), lambda i: (i, 0)),   # y_2 tile
                pl.BlockSpec((tile_n, 1), lambda i: (i, 0)),   # targets tile
            ],
            out_specs=[
                pl.BlockSpec((tile_n, 1), lambda i: (i, 0)),
                pl.BlockSpec((tile_n, 1), lambda i: (i, 0)),
                pl.BlockSpec((tile_n, 1), lambda i: (i, 0)),
            ],
        ),
        compiler_params=pltpu.CompilerParams(
            dimension_semantics=("parallel",),   # shards over both v7x TCs
            vmem_limit_bytes=vmem_limit,
        ),
    )(y_1, y_2, tgt_col)

    # Lane-dense relayout of the tiny per-sample vectors (wrapper-side layout
    # plumbing; ~12 bytes / sample).
    ce1_row = ce1_col.reshape(1, n_pad)
    ce2_row = ce2_col.reshape(1, n_pad)
    d_row = d_col.reshape(1, n_pad)
    kr = jnp.asarray(keep_rate, dtype=jnp.float32).reshape(1)

    idx_iters = max(1, int(n_pad - 1).bit_length())
    smem = pl.BlockSpec(memory_space=pltpu.MemorySpace.SMEM)

    # ---------------- phase 2: selection + the four scalars ----------------
    out = pl.pallas_call(
        functools.partial(_select_kernel, n_valid=N, n_pad=n_pad,
                          idx_iters=idx_iters),
        out_shape=jax.ShapeDtypeStruct((4,), jnp.float32),
        grid_spec=pltpu.PrefetchScalarGridSpec(
            num_scalar_prefetch=0,
            grid=(1,),
            in_specs=[
                smem,                                          # keep_rate
                pl.BlockSpec((1, n_pad), lambda i: (0, 0)),    # ce head 1
                pl.BlockSpec((1, n_pad), lambda i: (0, 0)),    # ce head 2
                pl.BlockSpec((1, n_pad), lambda i: (0, 0)),    # disagreement
            ],
            out_specs=smem,
        ),
        compiler_params=pltpu.CompilerParams(
            dimension_semantics=("arbitrary",),
            vmem_limit_bytes=vmem_limit,
        ),
    )(kr, ce1_row, ce2_row, d_row)

    return out[0], out[1], out[2], out[3]


# --------------------------------------------------------------------------
# Pure-numpy reference (mirrors the PyTorch module exactly)
# --------------------------------------------------------------------------
def reference_numpy(y1, y2, t, keep_rate):
    y1 = np.asarray(y1, np.float32)
    y2 = np.asarray(y2, np.float32)
    t = np.asarray(t)

    p1 = np.argmax(y1, 1)
    p2 = np.argmax(y2, 1)
    idx = np.where(p1 != p2)[0]
    if len(idx) == 0:
        y1u, y2u, tu = y1, y2, t
    else:
        y1u, y2u, tu = y1[idx], y2[idx], t[idx]

    def ce(y, tt):
        m = y.max(1, keepdims=True)
        lse = np.log(np.exp(y - m).sum(1, keepdims=True)) + m
        return lse[:, 0] - y[np.arange(len(tt)), tt]

    l1 = ce(y1u, tu)
    l2 = ce(y2u, tu)
    i1 = np.argsort(l1)
    i2 = np.argsort(l2)
    nk = int(keep_rate * len(tu))
    l1u = ce(y1u[i2[:nk]], tu[i2[:nk]]).mean()
    l2u = ce(y2u[i1[:nk]], tu[i1[:nk]]).mean()
    return np.array([l1u, l2u, l1.mean(), l2.mean()], np.float32)


if __name__ == "__main__":
    N, C = 16, 10
    keep_rate = 0.75          # exactly representable -> num_keep matches int()

    key = jax.random.PRNGKey(0)
    k1, k2, k3 = jax.random.split(key, 3)
    y_1 = jax.random.normal(k1, (N, C), dtype=jnp.float32)
    y_2 = jax.random.normal(k2, (N, C), dtype=jnp.float32)
    targets = jax.random.randint(k3, (N,), 0, C, dtype=jnp.int32)

    outs = co_teaching_loss_plus(y_1, y_2, targets, keep_rate=keep_rate)
    outs = jax.block_until_ready(outs)

    got = np.array([float(o) for o in outs], np.float32)
    want = reference_numpy(y_1, y_2, targets, keep_rate)
    np.testing.assert_allclose(got, want, rtol=1e-4, atol=1e-5)

    print("KERNEL_OK")
</pallas_src>

<mosaic_0001>
module attributes {stable_mosaic.version = 11 : i64} {
  func.func @_ce_disagree_kernel(%arg0: i32, %arg1: memref<16x10xf32, #tpu.memory_space<vmem>>, %arg2: memref<16x10xf32, #tpu.memory_space<vmem>>, %arg3: memref<16x1xi32, #tpu.memory_space<vmem>>, %arg4: memref<16x1xf32, #tpu.memory_space<vmem>>, %arg5: memref<16x1xf32, #tpu.memory_space<vmem>>, %arg6: memref<16x1xf32, #tpu.memory_space<vmem>>) attributes {dimension_semantics = [#tpu.dimension_semantics<parallel>], iteration_bounds = array<i64: 1>, scalar_prefetch = 0 : i64, scratch_operands = 0 : i64, tpu.core_type = #tpu.core_type<tc>, window_params = [{transform_indices = @transform_0, window_bounds = array<i64: 16, 10>}, {transform_indices = @transform_1, window_bounds = array<i64: 16, 10>}, {transform_indices = @transform_2, window_bounds = array<i64: 16, 1>}, {transform_indices = @transform_3, window_bounds = array<i64: 16, 1>}, {transform_indices = @transform_4, window_bounds = array<i64: 16, 1>}, {transform_indices = @transform_5, window_bounds = array<i64: 16, 1>}]} {
    %c0 = arith.constant 0 : index
    %c0_0 = arith.constant 0 : index
    %0 = vector.load %arg1[%c0, %c0_0] : memref<16x10xf32, #tpu.memory_space<vmem>>, vector<16x10xf32>
    %c0_1 = arith.constant 0 : index
    %c0_2 = arith.constant 0 : index
    %1 = vector.load %arg2[%c0_1, %c0_2] : memref<16x10xf32, #tpu.memory_space<vmem>>, vector<16x10xf32>
    %c0_3 = arith.constant 0 : index
    %c0_4 = arith.constant 0 : index
    %2 = vector.load %arg3[%c0_3, %c0_4] : memref<16x1xi32, #tpu.memory_space<vmem>>, vector<16x1xi32>
    %3 = tpu.iota {dimensions = array<i32: 1>} : vector<16x10xi32>
    %4 = vector.broadcast %2 : vector<16x1xi32> to vector<16x10xi32>
    %5 = arith.cmpi eq, %3, %4 : vector<16x10xi32>
    %6 = arith.sitofp %3 : vector<16x10xi32> to vector<16x10xf32>
    %cst = arith.constant dense<0xFF800000> : vector<16xf32>
    %7 = vector.multi_reduction <maximumf>, %0, %cst [1] : vector<16x10xf32> to vector<16xf32>
    %8 = vector.shape_cast %7 : vector<16xf32> to vector<16x1xf32>
    %cst_5 = arith.constant 0.000000e+00 : f32
    %9 = vector.broadcast %cst_5 : f32 to vector<16x10xf32>
    %10 = arith.select %5, %0, %9 : vector<16x10xi1>, vector<16x10xf32>
    %cst_6 = arith.constant dense<0.000000e+00> : vector<16xf32>
    %11 = vector.multi_reduction <add>, %10, %cst_6 [1] : vector<16x10xf32> to vector<16xf32>
    %12 = vector.shape_cast %11 : vector<16xf32> to vector<16x1xf32>
    %13 = vector.broadcast %8 : vector<16x1xf32> to vector<16x10xf32>
    %14 = arith.subf %0, %13 : vector<16x10xf32>
    %15 = math.exp %14 : vector<16x10xf32>
    %cst_7 = arith.constant dense<0.000000e+00> : vector<16xf32>
    %16 = vector.multi_reduction <add>, %15, %cst_7 [1] : vector<16x10xf32> to vector<16xf32>
    %17 = vector.shape_cast %16 : vector<16xf32> to vector<16x1xf32>
    %18 = math.log %17 : vector<16x1xf32>
    %19 = arith.subf %8, %12 : vector<16x1xf32>
    %20 = arith.addf %18, %19 : vector<16x1xf32>
    %21 = vector.broadcast %8 : vector<16x1xf32> to vector<16x10xf32>
    %22 = arith.cmpf oge, %0, %21 : vector<16x10xf32>
    %cst_8 = arith.constant 1.000000e+01 : f32
    %23 = vector.broadcast %cst_8 : f32 to vector<16x10xf32>
    %24 = arith.select %22, %6, %23 : vector<16x10xi1>, vector<16x10xf32>
    %cst_9 = arith.constant dense<0x7F800000> : vector<16xf32>
    %25 = vector.multi_reduction <minimumf>, %24, %cst_9 [1] : vector<16x10xf32> to vector<16xf32>
    %26 = vector.shape_cast %25 : vector<16xf32> to vector<16x1xf32>
    %cst_10 = arith.constant dense<0xFF800000> : vector<16xf32>
    %27 = vector.multi_reduction <maximumf>, %1, %cst_10 [1] : vector<16x10xf32> to vector<16xf32>
    %28 = vector.shape_cast %27 : vector<16xf32> to vector<16x1xf32>
    %cst_11 = arith.constant 0.000000e+00 : f32
    %29 = vector.broadcast %cst_11 : f32 to vector<16x10xf32>
    %30 = arith.select %5, %1, %29 : vector<16x10xi1>, vector<16x10xf32>
    %cst_12 = arith.constant dense<0.000000e+00> : vector<16xf32>
    %31 = vector.multi_reduction <add>, %30, %cst_12 [1] : vector<16x10xf32> to vector<16xf32>
    %32 = vector.shape_cast %31 : vector<16xf32> to vector<16x1xf32>
    %33 = vector.broadcast %28 : vector<16x1xf32> to vector<16x10xf32>
    %34 = arith.subf %1, %33 : vector<16x10xf32>
    %35 = math.exp %34 : vector<16x10xf32>
    %cst_13 = arith.constant dense<0.000000e+00> : vector<16xf32>
    %36 = vector.multi_reduction <add>, %35, %cst_13 [1] : vector<16x10xf32> to vector<16xf32>
    %37 = vector.shape_cast %36 : vector<16xf32> to vector<16x1xf32>
    %38 = math.log %37 : vector<16x1xf32>
    %39 = arith.subf %28, %32 : vector<16x1xf32>
    %40 = arith.addf %38, %39 : vector<16x1xf32>
    %41 = vector.broadcast %28 : vector<16x1xf32> to vector<16x10xf32>
    %42 = arith.cmpf oge, %1, %41 : vector<16x10xf32>
    %cst_14 = arith.constant 1.000000e+01 : f32
    %43 = vector.broadcast %cst_14 : f32 to vector<16x10xf32>
    %44 = arith.select %42, %6, %43 : vector<16x10xi1>, vector<16x10xf32>
    %cst_15 = arith.constant dense<0x7F800000> : vector<16xf32>
    %45 = vector.multi_reduction <minimumf>, %44, %cst_15 [1] : vector<16x10xf32> to vector<16xf32>
    %46 = vector.shape_cast %45 : vector<16xf32> to vector<16x1xf32>
    %c0_16 = arith.constant 0 : index
    %c0_17 = arith.constant 0 : index
    %47 = vector.load %arg4[%c0_16, %c0_17] : memref<16x1xf32, #tpu.memory_space<vmem>>, vector<16x1xf32>
    tpu.vector_store %arg4[%c0_16, %c0_17], %20 {strides = array<i32>} : memref<16x1xf32, #tpu.memory_space<vmem>>, vector<16x1xf32>,
    %c0_18 = arith.constant 0 : index
    %c0_19 = arith.constant 0 : index
    %48 = vector.load %arg5[%c0_18, %c0_19] : memref<16x1xf32, #tpu.memory_space<vmem>>, vector<16x1xf32>
    tpu.vector_store %arg5[%c0_18, %c0_19], %40 {strides = array<i32>} : memref<16x1xf32, #tpu.memory_space<vmem>>, vector<16x1xf32>,
    %49 = arith.cmpf one, %26, %46 : vector<16x1xf32>
    %cst_20 = arith.constant 1.000000e+00 : f32
    %cst_21 = arith.constant 0.000000e+00 : f32
    %50 = vector.broadcast %cst_20 : f32 to vector<16x1xf32>
    %51 = vector.broadcast %cst_21 : f32 to vector<16x1xf32>
    %52 = arith.select %49, %50, %51 : vector<16x1xi1>, vector<16x1xf32>
    %c0_22 = arith.constant 0 : index
    %c0_23 = arith.constant 0 : index
    %53 = vector.load %arg6[%c0_22, %c0_23] : memref<16x1xf32, #tpu.memory_space<vmem>>, vector<16x1xf32>
    tpu.vector_store %arg6[%c0_22, %c0_23], %52 {strides = array<i32>} : memref<16x1xf32, #tpu.memory_space<vmem>>, vector<16x1xf32>,
    return
  }
  func.func @transform_0(%arg0: i32) -> (i32, i32) {
    %c0_i32 = arith.constant 0 : i32
    %c0_i32_0 = arith.constant 0 : i32
    return %arg0, %c0_i32 : i32, i32
  }
  func.func @transform_1(%arg0: i32) -> (i32, i32) {
    %c0_i32 = arith.constant 0 : i32
    %c0_i32_0 = arith.constant 0 : i32
    return %arg0, %c0_i32 : i32, i32
  }
  func.func @transform_2(%arg0: i32) -> (i32, i32) {
    %c0_i32 = arith.constant 0 : i32
    %c0_i32_0 = arith.constant 0 : i32
    return %arg0, %c0_i32 : i32, i32
  }
  func.func @transform_3(%arg0: i32) -> (i32, i32) {
    %c0_i32 = arith.constant 0 : i32
    %c0_i32_0 = arith.constant 0 : i32
    return %arg0, %c0_i32 : i32, i32
  }
  func.func @transform_4(%arg0: i32) -> (i32, i32) {
    %c0_i32 = arith.constant 0 : i32
    %c0_i32_0 = arith.constant 0 : i32
    return %arg0, %c0_i32 : i32, i32
  }
  func.func @transform_5(%arg0: i32) -> (i32, i32) {
    %c0_i32 = arith.constant 0 : i32
    %c0_i32_0 = arith.constant 0 : i32
    return %arg0, %c0_i32 : i32, i32
  }
}

</mosaic_0001>

<bundles_post_ra>
// kernel: tpu_custom_call.1
= control target key start
LH: loop header
LB: loop body
LE: loop exit
PB: predicated region body
PF: predicated region fallthrough
CT: control target
= control target key end

     0   :  { %11 = vsyncpa [#allocation3], 0  ;;  %s208_s18 = smov [#allocation2]   ;;  %s349_s0 = inlined_call_operand.vmem [shape: f32[16,10], index: 0, kind: input, shape index: {}]   ;;  %s350_s1 = inlined_call_operand.hbm [shape: f32[16,10], index: 1, kind: input, shape index: {}]   ;;  %s351_s2 = inlined_call_operand.vmem [shape: s32[16,1], index: 2, kind: input, shape index: {}]   ;;  %s352_s3 = inlined_call_operand.vmem [shape: f32[16,1], index: 3, kind: output, shape index: {0}]   ;;  %s353_s4 = inlined_call_operand.vmem [shape: f32[16,1], index: 4, kind: output, shape index: {1}]   ;;  %s354_s5 = inlined_call_operand.vmem [shape: f32[16,1], index: 5, kind: output, shape index: {2}]  }
   0x1   :  { %s19_s19 = sshll.u32 %s208_s18, 4  ;;  %s184_s22 = scalar_lea.hbm %s350_s1, 256  ;;  %s20_s19 = int_to_ptr.vmem [resolvable:$true] %s19_s19 }
   0x2   :  { %p185_p0 = scmp.ne.s32.totalorder %s350_s1, %s184_s22  ;;  %p188_p1 = scmp.lt.u32.totalorder %s184_s22, %s350_s1 }
   0x4   :  { %p190_p2 = pnand %p188_p1, %p185_p0 }
   0x6   :  { %193 = shalt.err (!%p190_p2)
}
   0x7   :  { %s194_s27 = scalar_lea.vmem %s20_s19, 256  ;;  %p199_p4 = scmp.lt.s32.totalorder %s20_s19, %s20_s19 }
   0x8   :  { %p195_p3 = scmp.ne.s32.totalorder %s20_s19, %s194_s27  ;;  %p200_p5 = scmp.lt.s32.totalorder %s194_s27, %s194_s27 }
   0xa   :  { %p201_p6 = por %p200_p5, %p199_p4 }
   0xc   :  { %p202_p7 = pnand %p201_p6, %p195_p3 }
   0xe   :  { %205 = shalt.err (!%p202_p7)
}
   0xf   :  { %s209_s28 = smov 128   ;;  %s210_s29 = smov 8  }
  0x10   :  { %25 = dma.hbm_to_vmem [thread:$0]  %s350_s1, 256, %s20_s19, [#allocation3], %s209_s28, %s209_s28, %s210_s29  }
  0x11   :  { %206 = dma.done.wait [#allocation3], 256  }
  0x12   :  { %207 = vsyncadd [#allocation3], 4294967040  ;;  %v211_v0 = vmov 0   ;;  %vm48_vm0 = vcmask 80896   ;;  %v31_v1 = vld [vmem:[%s349_s0] sm:$0xff]  ;;  %v261_v2 = vld [vmem:[%s349_s0 + $0x8] sm:$0xff]  ;;  %v37_v20 = vlaneseq }
  0x13   :  { %166 = vset.pattern.permute.xlu0 %v211_v0  ;;  %167 = vset.pattern.permute.xlu1 %v211_v0  ;;  %v263_v3 = vld [vmem:[#allocation2] sm:$0xff]  ;;  %v49_v4 = vsel %vm48_vm0, %v31_v1, -inf  ;;  %v268_v6 = vld [vmem:[#allocation2 + $0x8] sm:$0xff]  ;;  %v52_v7 = vsel %vm48_vm0, %v261_v2, -inf  ;;  %vm137_vm7 = vcmask 7168   ;;  %v212_v63 = vmov 0.0  }
  0x14   :  { %v93_v5 = vsel %vm48_vm0, %v263_v3, -inf  ;;  %50 = vmax.xlane.f32.xlu0 %v49_v4  ;;  %v96_v8 = vsel %vm48_vm0, %v268_v6, -inf  ;;  %v36_v9 = vld [vmem:[%s351_s2 + $0x8] sm:$0xff]  ;;  %v35_v10 = vld [vmem:[%s351_s2] sm:$0xff]  ;;  %v38_v23 = vand.u32 127, %v37_v20 }
  0x15   :  { %94 = vmax.xlane.f32.xlu1 %v93_v5 }
  0x16   :  { %v47_v30 = vcvt.s32.f32 %v38_v23 }
  0x18   :  { %53 = vmax.xlane.f32.xlu0 %v52_v7 }
  0x19   :  { %97 = vmax.xlane.f32.xlu1 %v96_v8 }
  0x2a   :  { %43 = vperm.xlu1 %167, %v36_v9  }
  0x2e   :  { %40 = vperm.xlu0 %166, %v35_v10  }
  0xa1   :  { %v280_v11 = vpop.xlane.xlu0 %50 }
  0xa2   :  { %v282_v12 = vpop.xlane.xlu1 %94  ;;  %v63_v13 = vsub.f32 %v31_v1, %v280_v11  ;;  %vm83_vm3 = vcmp.ge.f32.partialorder %v31_v1, %v280_v11 }
  0xa3   :  { %v107_v17 = vsub.f32 %v263_v3, %v282_v12  ;;  %v85_v35 = vsel %vm83_vm3, %v47_v30, 10.0  ;;  %vm127_vm4 = vcmp.ge.f32.partialorder %v263_v3, %v282_v12 }
  0xa4   :  { %v65_v14 = vmul.f32 1.442695, %v63_v13  ;;  %v87_v38 = vsel %vm48_vm0, %v85_v35, inf  ;;  %v129_v39 = vsel %vm127_vm4, %v47_v30, 10.0 }
  0xa5   :  { %v285_v15 = vpop.xlane.xlu0 %53  ;;  %v109_v21 = vmul.f32 1.442695, %v107_v17  ;;  %v131_v42 = vsel %vm48_vm0, %v129_v39, inf }
  0xa6   :  { %168 = vpow2.f32 %v65_v14  ;;  %v64_v16 = vsub.f32 %v261_v2, %v285_v15  ;;  %v291_v18 = vpop.xlane.xlu1 %97  ;;  %vm84_vm5 = vcmp.ge.f32.partialorder %v261_v2, %v285_v15 }
  0xa7   :  { %v108_v22 = vsub.f32 %v268_v6, %v291_v18  ;;  %v86_v48 = vsel %vm84_vm5, %v47_v30, 10.0  ;;  %vm128_vm6 = vcmp.ge.f32.partialorder %v268_v6, %v291_v18 }
  0xa8   :  { %v67_v19 = vmul.f32 1.442695, %v64_v16  ;;  %v90_v49 = vsel %vm48_vm0, %v86_v48, inf  ;;  %v130_v50 = vsel %vm128_vm6, %v47_v30, 10.0 }
  0xa9   :  { %v111_v25 = vmul.f32 1.442695, %v108_v22  ;;  %v134_v51 = vsel %vm48_vm0, %v130_v50, inf }
  0xaa   :  { %170 = vpow2.f32 %v67_v19  ;;  %v44_v26 = vpop.permute.xlu1 %43 }
  0xab   :  { %172 = vpow2.f32 %v109_v21  ;;  %vm46_vm2 = vcmp.eq.s32.totalorder %v38_v23, %v44_v26 }
  0xac   :  { %174 = vpow2.f32 %v111_v25  ;;  %v56_v33 = vsel %vm46_vm2, %v261_v2, 0.0  ;;  %v100_v46 = vsel %vm46_vm2, %v268_v6, 0.0 }
  0xad   :  { %v41_v24 = vpop.permute.xlu0 %40  ;;  %v60_v36 = vsel %vm48_vm0, %v56_v33, 0.0  ;;  %v104_v47 = vsel %vm48_vm0, %v100_v46, 0.0 }
  0xae   :  { %vm45_vm1 = vcmp.eq.s32.totalorder %v38_v23, %v41_v24 }
  0xaf   :  { %v55_v28 = vsel %vm45_vm1, %v31_v1, 0.0  ;;  %v99_v44 = vsel %vm45_vm1, %v263_v3, 0.0 }
  0xb0   :  { %v169_v27 = vpop.eup %168  ;;  %v57_v31 = vsel %vm48_vm0, %v55_v28, 0.0  ;;  %v101_v45 = vsel %vm48_vm0, %v99_v44, 0.0 }
  0xb1   :  { %v69_v29 = vsel %vm48_vm0, %v169_v27, 0.0 }
  0xb2   :  { %70 = vadd.xlane.f32.xlu1 %v69_v29 }
  0xb4   :  { %v171_v32 = vpop.eup %170 }
  0xb5   :  { %v72_v34 = vsel %vm48_vm0, %v171_v32, 0.0  ;;  %v173_v37 = vpop.eup %172 }
  0xb6   :  { %73 = vadd.xlane.f32.xlu0 %v72_v34  ;;  %58 = vadd.xlane.f32.xlu1 %v57_v31  ;;  %v113_v40 = vsel %vm48_vm0, %v173_v37, 0.0  ;;  %v175_v41 = vpop.eup %174 }
  0xb7   :  { %v116_v43 = vsel %vm48_vm0, %v175_v41, 0.0 }
  0xba   :  { %88 = vmin.xlane.f32.xlu0 %v87_v38  ;;  %61 = vadd.xlane.f32.xlu1 %v60_v36 }
  0xbe   :  { %132 = vmin.xlane.f32.xlu0 %v131_v42  ;;  %114 = vadd.xlane.f32.xlu1 %v113_v40 }
  0xc2   :  { %117 = vadd.xlane.f32.xlu1 %v116_v43 }
  0xc6   :  { %102 = vadd.xlane.f32.xlu1 %v101_v45 }
  0xca   :  { %105 = vadd.xlane.f32.xlu1 %v104_v47 }
  0xce   :  { %91 = vmin.xlane.f32.xlu1 %v90_v49 }
  0xd2   :  { %135 = vmin.xlane.f32.xlu1 %v134_v51 }
 0x13f   :  { %v71_v52 = vpop.xlane.xlu1 %70 }
 0x140   :  { %176 = vlog2.f32 %v71_v52 }
 0x143   :  { %v59_v53 = vpop.xlane.xlu1 %58  ;;  %v74_v54 = vpop.xlane.xlu0 %73 }
 0x144   :  { %178 = vlog2.f32 %v74_v54  ;;  %v79_v59 = vsub.f32 %v280_v11, %v59_v53 }
 0x147   :  { %v62_v55 = vpop.xlane.xlu1 %61  ;;  %v89_v56 = vpop.xlane.xlu0 %88 }
 0x148   :  { %v80_v3 = vsub.f32 %v285_v15, %v62_v55 }
 0x14a   :  { %v177_v57 = vpop.eup %176 }
 0x14b   :  { %v76_v58 = vmul.f32 0.6931472, %v177_v57  ;;  %v115_v60 = vpop.xlane.xlu1 %114  ;;  %v133_v61 = vpop.xlane.xlu0 %132 }
 0x14c   :  { %180 = vlog2.f32 %v115_v60  ;;  %vm142_vm8 = vcmp.ne.f32.partialorder %v89_v56, %v133_v61 }
 0x14d   :  { %v81_v62 = vadd.f32 %v79_v59, %v76_v58  ;;  %v144_v0 = vsel %vm142_vm8, 1.0, %v212_v63 }
 0x14e   :  { %v179_v1 = vpop.eup %178  ;;  %146 = vst.msk [vmem:[%s354_s5] sm:$0xff] %vm137_vm7, %v144_v0 }
 0x14f   :  { %138 = vst.msk [vmem:[%s352_s3] sm:$0xff] %vm137_vm7, %v81_v62  ;;  %v78_v2 = vmul.f32 0.6931472, %v179_v1  ;;  %v118_v4 = vpop.xlane.xlu1 %117 }
 0x150   :  { %182 = vlog2.f32 %v118_v4 }
 0x151   :  { %v82_v5 = vadd.f32 %v80_v3, %v78_v2 }
 0x153   :  { %139 = vst.msk [vmem:[%s352_s3 + $0x8] sm:$0xff] %vm137_vm7, %v82_v5  ;;  %v103_v6 = vpop.xlane.xlu1 %102 }
 0x154   :  { %v123_v9 = vsub.f32 %v282_v12, %v103_v6 }
 0x156   :  { %v181_v7 = vpop.eup %180 }
 0x157   :  { %v120_v8 = vmul.f32 0.6931472, %v181_v7  ;;  %v106_v10 = vpop.xlane.xlu1 %105 }
 0x158   :  { %v124_v15 = vsub.f32 %v291_v18, %v106_v10 }
 0x159   :  { %v125_v11 = vadd.f32 %v123_v9, %v120_v8 }
 0x15a   :  { %v183_v13 = vpop.eup %182 }
 0x15b   :  { %v122_v14 = vmul.f32 0.6931472, %v183_v13  ;;  %140 = vst.msk [vmem:[%s353_s4] sm:$0xff] %vm137_vm7, %v125_v11  ;;  %v92_v16 = vpop.xlane.xlu1 %91 }
 0x15d   :  { %v126_v17 = vadd.f32 %v124_v15, %v122_v14 }
 0x15f   :  { %141 = vst.msk [vmem:[%s353_s4 + $0x8] sm:$0xff] %vm137_vm7, %v126_v17  ;;  %v136_v19 = vpop.xlane.xlu1 %135 }
 0x160   :  { %vm143_vm9 = vcmp.ne.f32.partialorder %v92_v16, %v136_v19 }
 0x161   :  { %v145_v12 = vsel %vm143_vm9, 1.0, %v212_v63 }
 0x162   :  { %147 = vst.msk [vmem:[%s354_s5 + $0x8] sm:$0xff] %vm137_vm7, %v145_v12 }
 0x163   :  { %160 = vsyncpa [#allocation3], 1 }

</bundles_post_ra>
